<compile_context>
chip_gen: v7x
topology: tpu7x:2x2x1
jax: 0.10.0
libtpu: 0.0.40
codegen_flags: <defaults>
</compile_context>

<pallas_src>
import math
import functools

import jax
import jax.numpy as jnp
from jax import lax
from jax.experimental import pallas as pl
from jax.experimental.pallas import tpu as pltpu

_PI_CONST = 3.14159265  # same constant the PyTorch module uses


def _cos_m_theta(x, m):
    """Chebyshev polynomial cos(m*theta) from cos(theta), Horner form."""
    x2 = x * x
    if m == 0:
        return jnp.ones_like(x)
    if m == 1:
        return x
    if m == 2:
        return 2.0 * x2 - 1.0
    if m == 3:
        return x * (4.0 * x2 - 3.0)
    if m == 4:
        return x2 * (8.0 * x2 - 8.0) + 1.0
    if m == 5:
        return x * (x2 * (16.0 * x2 - 20.0) + 5.0)
    raise ValueError("m must be in [0, 5]")


def _angle_linear_kernel(x_ref, w_ref, inv_wlen_ref, xlen_ref, inv_xlen_ref,
                         cos_ref, phi_ref, *, m, phiflag, matmul_dtype):
    x = x_ref[...]          # (b_tile, in_f)    native dtype
    w = w_ref[...]          # (in_f, out_tile)  native dtype
    if matmul_dtype is not None:
        x = x.astype(matmul_dtype)
        w = w.astype(matmul_dtype)

    # x @ w on the MXU, f32 accumulation.
    xw = jnp.dot(x, w, preferred_element_type=jnp.float32)      # (b, out)

    inv_wlen = inv_wlen_ref[...]    # (1, out_tile) f32  (hoisted to wrapper)
    xlen = xlen_ref[...]            # (b_tile, 1)   f32  (hoisted to wrapper)
    inv_xlen = inv_xlen_ref[...]    # (b_tile, 1)   f32  (hoisted to wrapper)

    cos_theta = jnp.clip(xw * inv_wlen * inv_xlen, -1.0, 1.0)   # (b, out)
    cos_out = cos_theta * xlen                                  # one broadcast mul

    if phiflag:
        cos_m = _cos_m_theta(cos_theta, m)
        # k = floor(m * acos(cos_theta) / pi_c). acos is monotone decreasing on
        # [-1,1], so floor(m*theta/pi_c) == #{ j in 1..m : cos_theta <= cos(j*pi_c/m) }.
        # Accumulate the count and its parity directly (no acos, no float mod).
        k = jnp.zeros_like(cos_theta)
        parity = jnp.zeros(cos_theta.shape, dtype=jnp.bool_)
        for j in range(1, m + 1):
            cond = cos_theta <= math.cos(j * _PI_CONST / m)
            k = k + cond.astype(jnp.float32)
            parity = parity ^ cond
        signed_cos_m = jnp.where(parity, -cos_m, cos_m)          # (-1)^k * cos(m*theta)
        phi_out = (signed_cos_m - 2.0 * k) * xlen
    else:
        phi_out = cos_out

    cos_ref[...] = cos_out.astype(cos_ref.dtype)
    phi_ref[...] = phi_out.astype(phi_ref.dtype)


def _round_up(v, n):
    return (v + n - 1) // n * n


def _block_bytes(b_tile, out_tile, in_f, isx, isw, iso):
    """Bytes of one pipelined buffer set (x, W, norms, two outputs)."""
    return (b_tile * in_f * isx
            + in_f * out_tile * isw
            + out_tile * 4
            + 2 * b_tile * 4
            + 2 * b_tile * out_tile * iso)


def angle_linear(x, weight, m=4, phiflag=True, b_tile=None, out_tile=None,
                 matmul_dtype=None, vmem_block_budget=24 << 20):
    """Pallas implementation of AngleLinear.forward. Returns (cos_theta, phi_theta).

    matmul_dtype: optionally cast MXU operands (e.g. jnp.bfloat16) inside the
    kernel; accumulation stays f32. Default None keeps the input dtype.
    """
    B, in_f = x.shape
    in_f2, out_f = weight.shape
    assert in_f == in_f2, "x / weight in_features mismatch"
    assert 0 <= m <= 5, "m must be in [0, 5]"

    out_dtype = x.dtype
    isx = jnp.dtype(x.dtype).itemsize
    isw = jnp.dtype(weight.dtype).itemsize
    iso = jnp.dtype(out_dtype).itemsize

    # Lane/sublane-aligned tiles: out tile multiple of 128, batch tile multiple of 8.
    if out_tile is None:
        out_tile = min(1024, _round_up(out_f, 128))
    if b_tile is None:
        b_tile = min(256, _round_up(B, 8))

    # Shrink tiles until the double-buffered working set fits the budget
    # (budget chosen so the same config is safe on v7x's 64 MiB VMEM).
    while 2 * _block_bytes(b_tile, out_tile, in_f, isx, isw, iso) > vmem_block_budget:
        if b_tile > 128:
            b_tile //= 2
        elif out_tile > 256:
            out_tile //= 2
        elif b_tile > 8:
            b_tile //= 2
        elif out_tile > 128:
            out_tile //= 2
        else:
            break

    total_block_bytes = 2 * _block_bytes(b_tile, out_tile, in_f, isx, isw, iso)
    vmem_limit = max(32 << 20, int(total_block_bytes * 1.5))

    # Hoisted norm computations (one cheap XLA reduction each).
    # Note: the renorm(2,1,1e-5).mul(1e5) column scale cancels in (x@w)/||w||.
    # Zero-norm rows/columns give inf here, matching the reference's /~0.
    xf = x.astype(jnp.float32)
    wf = weight.astype(jnp.float32)
    sumsq_x = jnp.sum(xf * xf, axis=1, keepdims=True)            # (B, 1)
    sumsq_w = jnp.sum(wf * wf, axis=0, keepdims=True)            # (1, out_f)
    xlen = jnp.sqrt(sumsq_x)
    inv_xlen = lax.rsqrt(sumsq_x)
    inv_wlen = lax.rsqrt(sumsq_w)

    # Grid: out axis outer, batch axis inner (fastest) so the W tile (whose
    # block index depends only on the out axis) is DMA'd once per out-tile.
    n_out = pl.cdiv(out_f, out_tile)
    n_b = pl.cdiv(B, b_tile)
    grid = (n_out, n_b)

    # Shard the (usually large) out axis across cores; if there is only one
    # out tile, let the batch axis carry the parallelism instead. No grid step
    # carries state, so either marking is correct.
    dims = ("parallel", "arbitrary") if n_out >= 2 else ("arbitrary", "parallel")

    kernel = functools.partial(_angle_linear_kernel, m=m, phiflag=phiflag,
                               matmul_dtype=matmul_dtype)

    cost = pl.CostEstimate(
        flops=int(2 * B * in_f * out_f),
        transcendentals=0,
        bytes_accessed=int(B * in_f * isx * n_out            # x re-streamed per out tile
                           + in_f * out_f * isw              # W streamed once
                           + out_f * 4 * n_b + 2 * B * 4 * n_out
                           + 2 * B * out_f * iso),
    )

    cos_t, phi_t = pl.pallas_call(
        kernel,
        out_shape=(
            jax.ShapeDtypeStruct((B, out_f), out_dtype),
            jax.ShapeDtypeStruct((B, out_f), out_dtype),
        ),
        grid=grid,
        in_specs=[
            pl.BlockSpec((b_tile, in_f), lambda o, b: (b, 0)),      # x tile
            # TODO(synk): try pipeline_mode=pl.Buffered(3) on the W spec if a
            # DMA bubble shows up at out-tile boundaries (costs one extra W tile).
            pl.BlockSpec((in_f, out_tile), lambda o, b: (0, o)),    # W tile (reused over b)
            pl.BlockSpec((1, out_tile), lambda o, b: (0, o)),       # inv_wlen
            pl.BlockSpec((b_tile, 1), lambda o, b: (b, 0)),         # xlen
            pl.BlockSpec((b_tile, 1), lambda o, b: (b, 0)),         # inv_xlen
        ],
        out_specs=(
            pl.BlockSpec((b_tile, out_tile), lambda o, b: (b, o)),
            pl.BlockSpec((b_tile, out_tile), lambda o, b: (b, o)),
        ),
        compiler_params=pltpu.CompilerParams(
            dimension_semantics=dims,
            vmem_limit_bytes=vmem_limit),
        cost_estimate=cost,
    )(x, weight, inv_wlen, xlen, inv_xlen)

    return cos_t, phi_t


def _reference(x, weight, m=4, phiflag=True):
    """Literal (pure-JAX) translation of the PyTorch forward, for validation."""
    col_norm = jnp.sqrt(jnp.sum(weight * weight, axis=0, keepdims=True))
    scale = jnp.where(col_norm > 1e-5, 1e-5 / (col_norm + 1e-7), 1.0)
    w = weight * scale * 100000.0
    xlen = jnp.sqrt(jnp.sum(x * x, axis=1, keepdims=True))
    wlen = jnp.sqrt(jnp.sum(w * w, axis=0, keepdims=True))
    cos_theta = jnp.clip((x @ w) / xlen / wlen, -1.0, 1.0)
    if phiflag:
        cos_m = _cos_m_theta(cos_theta, m)
        theta = jnp.arccos(cos_theta)
        k = jnp.floor(m * theta / _PI_CONST)
        sign = 1.0 - 2.0 * jnp.mod(k, 2.0)
        phi_theta = sign * cos_m - 2.0 * k
    else:
        phi_theta = cos_theta
    return cos_theta * xlen, phi_theta * xlen


if __name__ == "__main__":
    key = jax.random.PRNGKey(0)
    B, in_features, out_features = 8, 32, 16

    kx, kw = jax.random.split(key)
    x = jax.random.normal(kx, (B, in_features), dtype=jnp.float32)

    # Deterministic stand-in for nn.init.kaiming_uniform_(weight):
    # default a=0 -> gain = sqrt(2); fan_in = weight.size(1) = out_features;
    # bound = gain * sqrt(3 / fan_in); uniform in [-bound, bound].
    gain = math.sqrt(2.0)
    bound = gain * math.sqrt(3.0 / out_features)
    weight = jax.random.uniform(
        kw, (in_features, out_features), dtype=jnp.float32,
        minval=-bound, maxval=bound)

    cos_theta, phi_theta = angle_linear(x, weight, m=4, phiflag=True)
    jax.block_until_ready((cos_theta, phi_theta))

    assert cos_theta.shape == (B, out_features)
    assert phi_theta.shape == (B, out_features)

    cos_ref, phi_ref = _reference(x, weight, m=4, phiflag=True)
    assert jnp.allclose(cos_theta, cos_ref, atol=1e-3, rtol=1e-3)
    assert jnp.allclose(phi_theta, phi_ref, atol=1e-2, rtol=1e-3)

    # phiflag=False branch: phi must equal cos.
    cos_nf, phi_nf = angle_linear(x, weight, m=4, phiflag=False)
    jax.block_until_ready((cos_nf, phi_nf))
    assert jnp.allclose(phi_nf, cos_nf)
    assert jnp.allclose(cos_nf, cos_ref, atol=1e-3, rtol=1e-3)

    # bf16 MXU-operand fast path (f32 accumulation); looser check since the
    # matmul operands are rounded to bf16.
    cos_bf, phi_bf = angle_linear(x, weight, m=4, phiflag=True,
                                  matmul_dtype=jnp.bfloat16)
    jax.block_until_ready((cos_bf, phi_bf))
    assert jnp.allclose(cos_bf, cos_ref, atol=5e-2, rtol=5e-2)

    print("KERNEL_OK")
</pallas_src>

<mosaic_0001>
module attributes {stable_mosaic.version = 11 : i64} {
  func.func @_angle_linear_kernel(%arg0: i32, %arg1: i32, %arg2: memref<8x32xf32, #tpu.memory_space<vmem>>, %arg3: memref<32x128xf32, #tpu.memory_space<vmem>>, %arg4: memref<1x128xf32, #tpu.memory_space<vmem>>, %arg5: memref<8x1xf32, #tpu.memory_space<vmem>>, %arg6: memref<8x1xf32, #tpu.memory_space<vmem>>, %arg7: memref<8x128xf32, #tpu.memory_space<vmem>>, %arg8: memref<8x128xf32, #tpu.memory_space<vmem>>) attributes {dimension_semantics = [#tpu.dimension_semantics<arbitrary>, #tpu.dimension_semantics<parallel>], iteration_bounds = array<i64: 1, 1>, scalar_prefetch = 0 : i64, scratch_operands = 0 : i64, tpu.core_type = #tpu.core_type<tc>, window_params = [{transform_indices = @transform_0, window_bounds = array<i64: 8, 32>}, {transform_indices = @transform_1, window_bounds = array<i64: 32, 128>}, {transform_indices = @transform_2, window_bounds = array<i64: 1, 128>}, {transform_indices = @transform_3, window_bounds = array<i64: 8, 1>}, {transform_indices = @transform_4, window_bounds = array<i64: 8, 1>}, {transform_indices = @transform_5, window_bounds = array<i64: 8, 128>}, {transform_indices = @transform_6, window_bounds = array<i64: 8, 128>}]} {
    %c0 = arith.constant 0 : index
    %c0_0 = arith.constant 0 : index
    %0 = vector.load %arg2[%c0, %c0_0] : memref<8x32xf32, #tpu.memory_space<vmem>>, vector<8x32xf32>
    %c0_1 = arith.constant 0 : index
    %c0_2 = arith.constant 0 : index
    %1 = vector.load %arg3[%c0_1, %c0_2] : memref<32x128xf32, #tpu.memory_space<vmem>>, vector<32x128xf32>
    %cst = arith.constant dense<0.000000e+00> : vector<8x128xf32>
    %2 = tpu.matmul %0, %1, %cst {dimension_numbers = #tpu.dot_dimension_numbers<[1], [0], [0], [1], [0, 0, 1, 1], [], []>} : vector<8x32xf32>, vector<32x128xf32>, vector<8x128xf32> -> vector<8x128xf32>
    %c0_3 = arith.constant 0 : index
    %c0_4 = arith.constant 0 : index
    %3 = vector.load %arg4[%c0_3, %c0_4] : memref<1x128xf32, #tpu.memory_space<vmem>>, vector<1x128xf32>
    %c0_5 = arith.constant 0 : index
    %c0_6 = arith.constant 0 : index
    %4 = vector.load %arg5[%c0_5, %c0_6] : memref<8x1xf32, #tpu.memory_space<vmem>>, vector<8x1xf32>
    %c0_7 = arith.constant 0 : index
    %c0_8 = arith.constant 0 : index
    %5 = vector.load %arg6[%c0_7, %c0_8] : memref<8x1xf32, #tpu.memory_space<vmem>>, vector<8x1xf32>
    %6 = vector.broadcast %3 : vector<1x128xf32> to vector<8x128xf32>
    %7 = arith.mulf %2, %6 : vector<8x128xf32>
    %8 = vector.broadcast %5 : vector<8x1xf32> to vector<8x128xf32>
    %9 = arith.mulf %7, %8 : vector<8x128xf32>
    %cst_9 = arith.constant -1.000000e+00 : f32
    %cst_10 = arith.constant 1.000000e+00 : f32
    %10 = vector.broadcast %cst_9 : f32 to vector<8x128xf32>
    %11 = arith.maximumf %10, %9 : vector<8x128xf32>
    %12 = vector.broadcast %cst_10 : f32 to vector<8x128xf32>
    %13 = arith.minimumf %12, %11 : vector<8x128xf32>
    %14 = vector.broadcast %4 : vector<8x1xf32> to vector<8x128xf32>
    %15 = arith.mulf %13, %14 : vector<8x128xf32>
    %16 = arith.mulf %13, %13 : vector<8x128xf32>
    %cst_11 = arith.constant 8.000000e+00 : f32
    %17 = vector.broadcast %cst_11 : f32 to vector<8x128xf32>
    %18 = arith.mulf %17, %16 : vector<8x128xf32>
    %cst_12 = arith.constant 8.000000e+00 : f32
    %19 = vector.broadcast %cst_12 : f32 to vector<8x128xf32>
    %20 = arith.subf %18, %19 : vector<8x128xf32>
    %21 = arith.mulf %16, %20 : vector<8x128xf32>
    %cst_13 = arith.constant 1.000000e+00 : f32
    %22 = vector.broadcast %cst_13 : f32 to vector<8x128xf32>
    %23 = arith.addf %21, %22 : vector<8x128xf32>
    %cst_14 = arith.constant 0.000000e+00 : f32
    %24 = vector.broadcast %cst_14 : f32 to vector<8x128xf32>
    %false = arith.constant false
    %25 = vector.broadcast %false : i1 to vector<8x128xi1>
    %cst_15 = arith.constant 0.707106769 : f32
    %26 = vector.broadcast %cst_15 : f32 to vector<8x128xf32>
    %27 = arith.cmpf ole, %13, %26 : vector<8x128xf32>
    %28 = arith.extui %27 : vector<8x128xi1> to vector<8x128xi32>
    %29 = arith.sitofp %28 : vector<8x128xi32> to vector<8x128xf32>
    %30 = arith.addf %24, %29 : vector<8x128xf32>
    %31 = arith.xori %25, %27 : vector<8x128xi1>
    %cst_16 = arith.constant 1.79489656E-9 : f32
    %32 = vector.broadcast %cst_16 : f32 to vector<8x128xf32>
    %33 = arith.cmpf ole, %13, %32 : vector<8x128xf32>
    %34 = arith.extui %33 : vector<8x128xi1> to vector<8x128xi32>
    %35 = arith.sitofp %34 : vector<8x128xi32> to vector<8x128xf32>
    %36 = arith.addf %30, %35 : vector<8x128xf32>
    %37 = arith.xori %31, %33 : vector<8x128xi1>
    %cst_17 = arith.constant -0.707106769 : f32
    %38 = vector.broadcast %cst_17 : f32 to vector<8x128xf32>
    %39 = arith.cmpf ole, %13, %38 : vector<8x128xf32>
    %40 = arith.extui %39 : vector<8x128xi1> to vector<8x128xi32>
    %41 = arith.sitofp %40 : vector<8x128xi32> to vector<8x128xf32>
    %42 = arith.addf %36, %41 : vector<8x128xf32>
    %43 = arith.xori %37, %39 : vector<8x128xi1>
    %cst_18 = arith.constant -1.000000e+00 : f32
    %44 = vector.broadcast %cst_18 : f32 to vector<8x128xf32>
    %45 = arith.cmpf ole, %13, %44 : vector<8x128xf32>
    %46 = arith.extui %45 : vector<8x128xi1> to vector<8x128xi32>
    %47 = arith.sitofp %46 : vector<8x128xi32> to vector<8x128xf32>
    %48 = arith.addf %42, %47 : vector<8x128xf32>
    %49 = arith.xori %43, %45 : vector<8x128xi1>
    %cst_19 = arith.constant 0.000000e+00 : f32
    %50 = vector.broadcast %cst_19 : f32 to vector<8x128xf32>
    %51 = arith.subf %50, %23 : vector<8x128xf32>
    %52 = arith.select %49, %51, %23 : vector<8x128xi1>, vector<8x128xf32>
    %cst_20 = arith.constant 2.000000e+00 : f32
    %53 = vector.broadcast %cst_20 : f32 to vector<8x128xf32>
    %54 = arith.mulf %53, %48 : vector<8x128xf32>
    %55 = arith.subf %52, %54 : vector<8x128xf32>
    %56 = vector.broadcast %4 : vector<8x1xf32> to vector<8x128xf32>
    %57 = arith.mulf %55, %56 : vector<8x128xf32>
    %c0_21 = arith.constant 0 : index
    %c0_22 = arith.constant 0 : index
    %58 = vector.load %arg7[%c0_21, %c0_22] : memref<8x128xf32, #tpu.memory_space<vmem>>, vector<8x128xf32>
    tpu.vector_store %arg7[%c0_21, %c0_22], %15 {strides = array<i32>} : memref<8x128xf32, #tpu.memory_space<vmem>>, vector<8x128xf32>,
    %c0_23 = arith.constant 0 : index
    %c0_24 = arith.constant 0 : index
    %59 = vector.load %arg8[%c0_23, %c0_24] : memref<8x128xf32, #tpu.memory_space<vmem>>, vector<8x128xf32>
    tpu.vector_store %arg8[%c0_23, %c0_24], %57 {strides = array<i32>} : memref<8x128xf32, #tpu.memory_space<vmem>>, vector<8x128xf32>,
    return
  }
  func.func @transform_0(%arg0: i32, %arg1: i32) -> (i32, i32) {
    %c0_i32 = arith.constant 0 : i32
    %c0_i32_0 = arith.constant 0 : i32
    return %arg1, %c0_i32 : i32, i32
  }
  func.func @transform_1(%arg0: i32, %arg1: i32) -> (i32, i32) {
    %c0_i32 = arith.constant 0 : i32
    %c0_i32_0 = arith.constant 0 : i32
    return %c0_i32, %arg0 : i32, i32
  }
  func.func @transform_2(%arg0: i32, %arg1: i32) -> (i32, i32) {
    %c0_i32 = arith.constant 0 : i32
    %c0_i32_0 = arith.constant 0 : i32
    return %c0_i32, %arg0 : i32, i32
  }
  func.func @transform_3(%arg0: i32, %arg1: i32) -> (i32, i32) {
    %c0_i32 = arith.constant 0 : i32
    %c0_i32_0 = arith.constant 0 : i32
    return %arg1, %c0_i32 : i32, i32
  }
  func.func @transform_4(%arg0: i32, %arg1: i32) -> (i32, i32) {
    %c0_i32 = arith.constant 0 : i32
    %c0_i32_0 = arith.constant 0 : i32
    return %arg1, %c0_i32 : i32, i32
  }
  func.func @transform_5(%arg0: i32, %arg1: i32) -> (i32, i32) {
    %c0_i32 = arith.constant 0 : i32
    return %arg1, %arg0 : i32, i32
  }
  func.func @transform_6(%arg0: i32, %arg1: i32) -> (i32, i32) {
    %c0_i32 = arith.constant 0 : i32
    return %arg1, %arg0 : i32, i32
  }
}

</mosaic_0001>

<bundles_post_ra>
// kernel: tpu_custom_call.1
= control target key start
LH: loop header
LB: loop body
LE: loop exit
PB: predicated region body
PF: predicated region fallthrough
CT: control target
= control target key end

     0   :  { %12 = vsyncpa [#allocation3], 0  ;;  %v271_v3 = vmov 0.0|0.0   ;;  %vm272_vm0 = vmmov 0   ;;  %v273_v6 = vmov 0.0   ;;  %v274_v8 = vmov 0   ;;  %s368_s0 = inlined_call_operand.vmem [shape: f32[8,32], index: 0, kind: input, shape index: {}]   ;;  %s369_s1 = inlined_call_operand.vmem [shape: f32[32,16], index: 1, kind: input, shape index: {}]   ;;  %s370_s2 = inlined_call_operand.vmem [shape: f32[1,16], index: 2, kind: input, shape index: {}]   ;;  %s371_s3 = inlined_call_operand.vmem [shape: f32[8,1], index: 3, kind: input, shape index: {}]   ;;  %s372_s4 = inlined_call_operand.vmem [shape: f32[8,1], index: 4, kind: input, shape index: {}]   ;;  %s373_s5 = inlined_call_operand.hbm [shape: f32[8,16], index: 5, kind: output, shape index: {0}]   ;;  %s374_s6 = inlined_call_operand.hbm [shape: f32[8,16], index: 6, kind: output, shape index: {1}]  }
   0x1   :  { %v25_v0 = vld [vmem:[%s369_s1] sm:$0xff]  ;;  %v26_v1 = vld [vmem:[%s369_s1 + $0x8] sm:$0xff]  ;;  %v27_v2 = vld [vmem:[%s369_s1 + $0x10] sm:$0xff]  ;;  %210 = vmatprep.subr.bf16.mxu0 %v271_v3  ;;  %207 = vmatprep.mubr.msk.f32.mxu0 %vm272_vm0, %v273_v6 }
   0x2   :  { %v211_v4 = vpack.c.bf16 %v26_v1, %v25_v0  ;;  %v28_v5 = vld [vmem:[%s369_s1 + $0x18] sm:$0xff]  ;;  %v105_v7 = vld [vmem:[%s372_s4] sm:$0xff]  ;;  %222 = vset.pattern.permute.xlu0 %v274_v8 }
   0x3   :  { %13 = vsyncpa [#allocation5], 0  ;;  %v214_v9 = vpack.c.bf16 %v28_v5, %v27_v2  ;;  %115 = vperm.xlu0 %222, %v105_v7   ;;  %v104_v10 = vld [vmem:[%s371_s3] sm:$0xff]  ;;  %vm29_vm1 = vcmask 261120   ;;  %s275_s11 = smov [#allocation2]  }
   0x4   :  { %212 = vmatpush3.bf16.msra.mxu0 %v211_v4  ;;  %v24_v11 = vld [vmem:[%s368_s0] sm:$0xff]  ;;  %s164_s12 = sshll.u32 %s275_s11, 4  ;;  %s165_s12 = int_to_ptr.vmem [resolvable:$true] %s164_s12 }
   0x5   :  { %213 = vmatprep.subr.bf16.mxu0 %v271_v3  ;;  %v187_v12 = vld [vmem:[%s370_s2] ss:$0 sm:$0xff]  ;;  %s223_s0 = scalar_lea.vmem %s165_s12, 128  ;;  %p228_p1 = scmp.lt.s32.totalorder %s165_s12, %s165_s12 }
   0x6   :  { %p224_p0 = scmp.ne.s32.totalorder %s165_s12, %s223_s0  ;;  %p229_p2 = scmp.lt.s32.totalorder %s223_s0, %s223_s0 }
   0x7   :  { %123 = vperm.xlu0 %222, %v104_v10  }
   0x8   :  { %215 = vmatpush3.bf16.msra.mxu0 %v214_v9  ;;  %p230_p3 = por %p229_p2, %p228_p1 }
   0xa   :  { %p231_p4 = pnand %p230_p3, %p224_p0 }
   0xb   :  { %208 = vmatmul.mubr.msk.f32.vlgmr.msra.gmra.mrb[0].mxu0 %vm29_vm1, %v24_v11 }
  0x82   :  { %v116_v13 = vpop.permute.xlu0 %115 }
  0x86   :  { %v124_v19 = vpop.permute.xlu0 %123 }
  0xde   :  { %v99_v14 = vpop.f32.mrb[0].mxu0 }
  0xdf   :  { %v112_v15 = vmul.f32 %v187_v12, %v99_v14  ;;  %v209_v16 = vpop.f32.mrb[1].mxu0 }
  0xe1   :  { %v118_v17 = vmul.f32 %v116_v13, %v112_v15 }
  0xe3   :  { %v188_v18 = vclamps-f32 %v118_v17, 1.0 }
  0xe5   :  { %v126_v20 = vmul.f32 %v188_v18, %v124_v19  ;;  %v127_v21 = vmul.f32 %v188_v18, %v188_v18  ;;  %vm132_vm2 = vcmp.le.f32.partialorder %v188_v18, 0.70710677  ;;  %vm136_vm3 = vcmp.le.f32.partialorder %v188_v18, 1.7948966e-09 }
  0xe6   :  { %v190_v22 = vsel %vm132_vm2, 1.0, %v273_v6  ;;  %v191_v23 = vsel %vm136_vm3, 1.0, %v273_v6  ;;  %vm141_vm4 = vcmp.le.f32.partialorder %v188_v18, -0.70710677  ;;  %vm146_vm5 = vcmp.le.f32.partialorder %v188_v18, -1.0 }
  0xe7   :  { %v128_v24 = vmul.f32 8.0, %v127_v21  ;;  %v139_v25 = vadd.f32 %v191_v23, %v190_v22  ;;  %156 = vst [vmem:[#allocation2] sm:$0xff] %v126_v20  ;;  %v192_v26 = vsel %vm141_vm4, 1.0, %v273_v6 }
  0xe8   :  { %234 = shalt.err (!%p231_p4)
}
  0xe9   :  { %s235_s13 = scalar_lea.hbm %s373_s5, 128 }
  0xea   :  { %p236_p5 = scmp.ne.s32.totalorder %s373_s5, %s235_s13  ;;  %p239_p6 = scmp.lt.u32.totalorder %s235_s13, %s373_s5 }
  0xec   :  { %p241_p7 = pnand %p239_p6, %p236_p5 }
  0xee   :  { %244 = shalt.err (!%p241_p7)
}
  0xef   :  { %167 = dma.vmem_to_hbm [thread:$0]  %s165_s12, 128, %s373_s5, [#allocation3]   ;;  %v189_v27 = vadd.f32 -8.0, %v128_v24  ;;  %v144_v28 = vadd.f32 %v192_v26, %v139_v25  ;;  %vm140_vm6 = vmxor %vm132_vm2, %vm136_vm3  ;;  %v193_v30 = vsel %vm146_vm5, 1.0, %v273_v6 }
  0xf0   :  { %vm145_vm7 = vmxor %vm140_vm6, %vm141_vm4  ;;  %s276_s20 = smov [#allocation4]  }
  0xf1   :  { %v130_v29 = vmul.f32 %v189_v27, %v127_v21  ;;  %v149_v31 = vadd.f32 %v193_v30, %v144_v28  ;;  %vm150_vm8 = vmxor %vm145_vm7, %vm146_vm5  ;;  %s174_s21 = sshll.u32 %s276_s20, 4  ;;  %s175_s21 = int_to_ptr.vmem [resolvable:$true] %s174_s21 }
  0xf2   :  { %s245_s5 = scalar_lea.vmem %s175_s21, 128  ;;  %p250_p9 = scmp.lt.s32.totalorder %s175_s21, %s175_s21 }
  0xf3   :  { %v131_v32 = vadd.f32 1.0, %v130_v29  ;;  %v153_v34 = vmul.f32 2.0, %v149_v31  ;;  %p246_p8 = scmp.ne.s32.totalorder %s175_s21, %s245_s5  ;;  %p251_p10 = scmp.lt.s32.totalorder %s245_s5, %s245_s5 }
  0xf5   :  { %v151_v33 = vsub.f32 0.0, %v131_v32  ;;  %p252_p11 = por %p251_p10, %p250_p9 }
  0xf7   :  { %v152_v35 = vsel %vm150_vm8, %v151_v33, %v131_v32  ;;  %p253_p12 = pnand %p252_p11, %p246_p8 }
  0xf8   :  { %v154_v36 = vsub.f32 %v152_v35, %v153_v34 }
  0xfa   :  { %v155_v37 = vmul.f32 %v154_v36, %v124_v19 }
  0xfc   :  { %157 = vst [vmem:[#allocation4] sm:$0xff] %v155_v37 }
  0xfd   :  { %256 = shalt.err (!%p253_p12)
}
  0xfe   :  { %s257_s24 = scalar_lea.hbm %s374_s6, 128 }
  0xff   :  { %p258_p13 = scmp.ne.s32.totalorder %s374_s6, %s257_s24  ;;  %p261_p0 = scmp.lt.u32.totalorder %s257_s24, %s374_s6 }
 0x101   :  { %p263_p1 = pnand %p261_p0, %p258_p13 }
 0x103   :  { %266 = shalt.err (!%p263_p1)
}
 0x104   :  { %177 = dma.vmem_to_hbm [thread:$0]  %s175_s21, 128, %s374_s6, [#allocation5]  }
 0x105   :  { %267 = dma.done.wait [#allocation3], 128  }
 0x106   :  { %268 = vsyncadd [#allocation3], 4294967168 }
 0x107   :  { %269 = dma.done.wait [#allocation5], 128  }
 0x108   :  { %270 = vsyncadd [#allocation5], 4294967168 }
 0x109   :  { %184 = vsyncpa [#allocation3], 1 }
 0x10a   :  { %185 = vsyncpa [#allocation5], 1 }

</bundles_post_ra>
